<compile_context>
chip_gen: v5e
topology: v5e:2x2
jax: 0.10.0
libtpu: 0.0.40
codegen_flags: <defaults>
</compile_context>

<pallas_src>
import functools

import jax
import jax.numpy as jnp
from jax import lax
from jax.experimental import pallas as pl
from jax.experimental.pallas import tpu as pltpu


def _round_up(v, m):
    return (v + m - 1) // m * m


def _vmem_budget_bytes():
    """Physical VMEM minus headroom for compiler scratch / semaphores."""
    cap = 64 << 20  # conservative default (v7x per-TensorCore)
    try:
        info = pltpu.get_tpu_info()
        c = int(getattr(info, "vmem_capacity_bytes", 0))
        if c > 0:
            cap = c
    except Exception:
        pass
    return max(32 << 20, cap - (16 << 20))


def prepare_params(g1, w, b, g2):
    """One-time parameter prep (call at load time, NOT per forward).

    Folds the RMSNorm-1 gain into the linear weight, transposes it to
    (d_in, d_out) so the kernel contracts on the lane axis, and zero-pads the
    feature dims to multiples of 128 (only if ragged)."""
    d_out, d_in = w.shape
    dp_in = _round_up(d_in, 128)
    dp_out = _round_up(d_out, 128)
    w_prepped = (w * g1[None, :]).T.astype(w.dtype)  # (d_in, d_out)
    if (dp_in, dp_out) != (d_in, d_out):
        w_p = jnp.zeros((dp_in, dp_out), w.dtype).at[:d_in, :d_out].set(w_prepped)
        b_p = jnp.zeros((1, dp_out), b.dtype).at[0, :d_out].set(b)
        g2_p = jnp.zeros((1, dp_out), g2.dtype).at[0, :d_out].set(g2)
    else:
        w_p, b_p, g2_p = w_prepped, b.reshape(1, d_out), g2.reshape(1, d_out)
    return w_p, b_p, g2_p, d_in, d_out


# ---------------------------------------------------------------------------
# Kernels
# ---------------------------------------------------------------------------
def _kernel_resident(x_ref, w_ref, b_ref, g2_ref, o_ref, *, inv_din, inv_dout, eps):
    # x_ref : (tn, dp_in) row tile;  w_ref : (dp_in, dp_out) resident (g1 folded)
    xf = x_ref[...].astype(jnp.float32)
    ms1 = jnp.sum(xf * xf, axis=-1, keepdims=True) * inv_din
    h = xf * lax.rsqrt(ms1 + eps)
    y = jnp.dot(h.astype(w_ref.dtype), w_ref[...],
                preferred_element_type=jnp.float32) + b_ref[...].astype(jnp.float32)
    ms2 = jnp.sum(y * y, axis=-1, keepdims=True) * inv_dout
    o_ref[...] = (y * lax.rsqrt(ms2 + eps)
                  * g2_ref[...].astype(jnp.float32)).astype(o_ref.dtype)


def _kernel_ktiled(x_ref, w_ref, b_ref, g2_ref, o_ref, acc_ref, ss_ref,
                   *, inv_din, inv_dout, eps):
    # grid = (row tiles, K tiles); K ("arbitrary") is the contraction axis.
    k = pl.program_id(1)

    @pl.when(k == 0)
    def _():
        acc_ref[...] = jnp.zeros_like(acc_ref)
        ss_ref[...] = jnp.zeros_like(ss_ref)

    xf = x_ref[...].astype(jnp.float32)
    ss_ref[...] += jnp.sum(xf * xf, axis=-1, keepdims=True)
    acc_ref[...] += jnp.dot(x_ref[...].astype(w_ref.dtype), w_ref[...],
                            preferred_element_type=jnp.float32)

    @pl.when(k == pl.num_programs(1) - 1)
    def _():
        s = lax.rsqrt(ss_ref[...] * inv_din + eps)       # RMSNorm-1 per-row scale
        y = s * acc_ref[...] + b_ref[...].astype(jnp.float32)
        ms2 = jnp.sum(y * y, axis=-1, keepdims=True) * inv_dout
        o_ref[...] = (y * lax.rsqrt(ms2 + eps)
                      * g2_ref[...].astype(jnp.float32)).astype(o_ref.dtype)


# ---------------------------------------------------------------------------
# Wrapper
# ---------------------------------------------------------------------------
def _pick_tn(n, bytes_per_row, budget, prefer=1024):
    avail = max(budget, 8 * bytes_per_row)
    tn = max(8, min(prefer, avail // max(1, bytes_per_row)))
    if tn >= 256:
        tn = (tn // 256) * 256     # MXU-friendly on v6e/v7x (also multiple of 128 for v5e)
    elif tn >= 128:
        tn = 128
    else:
        tn = (tn // 8) * 8
    if tn >= n:
        if n >= 16:
            # keep >=2 row tiles so the "parallel" axis shards across TCs (v7x megacore)
            tn = min(tn, _round_up(pl.cdiv(n, 2), 8))
        else:
            tn = n
    return tn


def fused_forward(x, params, *, tn=None, tk=None):
    """x: (N, d_in).  params: output of prepare_params()."""
    w_p, b_p, g2_p, d_in, d_out = params
    dp_in, dp_out = w_p.shape
    n = x.shape[0]
    xsize = x.dtype.itemsize
    wsize = w_p.dtype.itemsize
    eps = float(jnp.finfo(x.dtype).eps)  # nn.RMSNorm(eps=None) -> input-dtype eps

    # Feature padding only when d_in is ragged (one copy); rows are never padded.
    x_in = x if dp_in == d_in else jnp.pad(x, ((0, 0), (0, dp_in - d_in)))

    budget = _vmem_budget_bytes()
    weight_bytes = dp_in * dp_out * wsize
    use_ktile = (tk is not None) or (weight_bytes > budget // 2)
    common = dict(inv_din=1.0 / d_in, inv_dout=1.0 / d_out, eps=eps)

    if not use_ktile:
        if tn is None:
            bytes_per_row = 2 * dp_in * xsize + 2 * dp_out * xsize   # x + out, double-buffered
            tn = _pick_tn(n, bytes_per_row, budget - weight_bytes - (2 << 20))
        out_p = pl.pallas_call(
            functools.partial(_kernel_resident, **common),
            out_shape=jax.ShapeDtypeStruct((n, dp_out), x.dtype),
            grid_spec=pltpu.PrefetchScalarGridSpec(
                num_scalar_prefetch=0,
                grid=(pl.cdiv(n, tn),),
                in_specs=[
                    pl.BlockSpec((tn, dp_in), lambda i: (i, 0)),
                    pl.BlockSpec((dp_in, dp_out), lambda i: (0, 0),
                                 pipeline_mode=pl.Buffered(1)),   # resident, single copy
                    pl.BlockSpec((1, dp_out), lambda i: (0, 0),
                                 pipeline_mode=pl.Buffered(1)),
                    pl.BlockSpec((1, dp_out), lambda i: (0, 0),
                                 pipeline_mode=pl.Buffered(1)),
                ],
                out_specs=pl.BlockSpec((tn, dp_out), lambda i: (i, 0)),
            ),
            compiler_params=pltpu.CompilerParams(
                dimension_semantics=("parallel",),
                vmem_limit_bytes=budget,
            ),
        )(x_in, w_p, b_p, g2_p)
    else:
        if tk is None:
            tk = 128
            for cand in (2048, 1024, 512, 256):
                if dp_in % cand == 0 and 2 * cand * dp_out * wsize <= budget // 2:
                    tk = cand
                    break
        assert dp_in % tk == 0, "tk must divide the padded input feature dim"
        if tn is None:
            bytes_per_row = (2 * tk * xsize + 2 * dp_out * xsize + dp_out * 4 + 4)
            tn = _pick_tn(n, bytes_per_row,
                          budget - 2 * tk * dp_out * wsize - (2 << 20), prefer=512)
        out_p = pl.pallas_call(
            functools.partial(_kernel_ktiled, **common),
            out_shape=jax.ShapeDtypeStruct((n, dp_out), x.dtype),
            grid_spec=pltpu.PrefetchScalarGridSpec(
                num_scalar_prefetch=0,
                grid=(pl.cdiv(n, tn), dp_in // tk),
                in_specs=[
                    pl.BlockSpec((tn, tk), lambda i, k: (i, k)),
                    pl.BlockSpec((tk, dp_out), lambda i, k: (k, 0)),
                    pl.BlockSpec((1, dp_out), lambda i, k: (0, 0),
                                 pipeline_mode=pl.Buffered(1)),
                    pl.BlockSpec((1, dp_out), lambda i, k: (0, 0),
                                 pipeline_mode=pl.Buffered(1)),
                ],
                out_specs=pl.BlockSpec((tn, dp_out), lambda i, k: (i, 0)),
                scratch_shapes=[
                    pltpu.VMEM((tn, dp_out), jnp.float32),   # y accumulator
                    pltpu.VMEM((tn, 1), jnp.float32),        # running sum(x^2)
                ],
            ),
            compiler_params=pltpu.CompilerParams(
                dimension_semantics=("parallel", "arbitrary"),
                vmem_limit_bytes=budget,
            ),
        )(x_in, w_p, b_p, g2_p)

    return out_p if dp_out == d_out else out_p[:, :d_out]


def reference_forward(x, g1, w, b, g2):
    eps = float(jnp.finfo(x.dtype).eps)

    def rms(v, g):
        return v * lax.rsqrt(jnp.mean(v * v, axis=-1, keepdims=True) + eps) * g

    y = jnp.dot(rms(x, g1), w.T, precision=lax.Precision.HIGHEST) + b
    return rms(y, g2)


if __name__ == "__main__":
    key = jax.random.PRNGKey(0)
    kx, kw, kb, kg1, kg2, kx2, kw2, kb2 = jax.random.split(key, 8)

    # ---- Shapes from the module: x = torch.randn(4, 4); RMSNorm(4)/Linear(4,4)/RMSNorm(4)
    N, D = 4, 4
    x = jax.random.normal(kx, (N, D), dtype=jnp.float32)
    g1 = 1.0 + 0.1 * jax.random.normal(kg1, (D,), dtype=jnp.float32)
    w = jax.random.normal(kw, (D, D), dtype=jnp.float32) * 0.5      # Linear weight (out, in)
    b = jax.random.normal(kb, (D,), dtype=jnp.float32) * 0.1
    g2 = 1.0 + 0.1 * jax.random.normal(kg2, (D,), dtype=jnp.float32)

    params = prepare_params(g1, w, b, g2)       # one-time prep (g1 fold, transpose, pad)
    out = fused_forward(x, params)
    jax.block_until_ready(out)
    ref = reference_forward(x, g1, w, b, g2)
    assert out.shape == (N, D)
    assert jnp.allclose(out, ref, atol=1e-5, rtol=1e-5), float(jnp.max(jnp.abs(out - ref)))

    # ---- Small aligned-shape check: no-pad fast path, row clamping (72 not a multiple
    #      of the tile) and the K-tiled accumulator path (forced via tk=128).
    N2, D2 = 72, 256
    x2 = jax.random.normal(kx2, (N2, D2), dtype=jnp.float32)
    g1b = 1.0 + 0.05 * jax.random.normal(kg1, (D2,), dtype=jnp.float32)
    w2 = jax.random.normal(kw2, (D2, D2), dtype=jnp.float32) * (D2 ** -0.5)
    b2 = jax.random.normal(kb2, (D2,), dtype=jnp.float32) * 0.1
    g2b = 1.0 + 0.05 * jax.random.normal(kg2, (D2,), dtype=jnp.float32)

    params2 = prepare_params(g1b, w2, b2, g2b)
    out2 = fused_forward(x2, params2, tk=128)
    jax.block_until_ready(out2)
    ref2 = reference_forward(x2, g1b, w2, b2, g2b)
    assert out2.shape == (N2, D2)
    assert jnp.allclose(out2, ref2, atol=2e-4, rtol=2e-4), float(jnp.max(jnp.abs(out2 - ref2)))

    print("KERNEL_OK")
</pallas_src>

<mosaic_0001>
module attributes {stable_mosaic.version = 11 : i64} {
  func.func @_kernel_resident(%arg0: i32, %arg1: memref<4x128xf32, #tpu.memory_space<vmem>>, %arg2: memref<128x128xf32, #tpu.memory_space<vmem>>, %arg3: memref<1x128xf32, #tpu.memory_space<vmem>>, %arg4: memref<1x128xf32, #tpu.memory_space<vmem>>, %arg5: memref<4x128xf32, #tpu.memory_space<vmem>>) attributes {dimension_semantics = [#tpu.dimension_semantics<parallel>], iteration_bounds = array<i64: 1>, scalar_prefetch = 0 : i64, scratch_operands = 0 : i64, tpu.core_type = #tpu.core_type<tc>, window_params = [{transform_indices = @transform_0, window_bounds = array<i64: 4, 128>}, {pipeline_mode = #tpu.pipeline_mode<synchronous>, transform_indices = @transform_1, window_bounds = array<i64: 128, 128>}, {pipeline_mode = #tpu.pipeline_mode<synchronous>, transform_indices = @transform_2, window_bounds = array<i64: 1, 128>}, {pipeline_mode = #tpu.pipeline_mode<synchronous>, transform_indices = @transform_3, window_bounds = array<i64: 1, 128>}, {transform_indices = @transform_4, window_bounds = array<i64: 4, 128>}]} {
    %c0 = arith.constant 0 : index
    %c0_0 = arith.constant 0 : index
    %0 = vector.load %arg1[%c0, %c0_0] : memref<4x128xf32, #tpu.memory_space<vmem>>, vector<4x128xf32>
    %1 = arith.mulf %0, %0 : vector<4x128xf32>
    %cst = arith.constant dense<0.000000e+00> : vector<4xf32>
    %2 = vector.multi_reduction <add>, %1, %cst [1] : vector<4x128xf32> to vector<4xf32>
    %3 = vector.shape_cast %2 : vector<4xf32> to vector<4x1xf32>
    %cst_1 = arith.constant 2.500000e-01 : f32
    %4 = vector.broadcast %cst_1 : f32 to vector<4x1xf32>
    %5 = arith.mulf %3, %4 : vector<4x1xf32>
    %cst_2 = arith.constant 1.1920929E-7 : f32
    %6 = vector.broadcast %cst_2 : f32 to vector<4x1xf32>
    %7 = arith.addf %5, %6 : vector<4x1xf32>
    %8 = math.rsqrt %7 : vector<4x1xf32>
    %9 = vector.broadcast %8 : vector<4x1xf32> to vector<4x128xf32>
    %10 = arith.mulf %0, %9 : vector<4x128xf32>
    %c0_3 = arith.constant 0 : index
    %c0_4 = arith.constant 0 : index
    %11 = vector.load %arg2[%c0_3, %c0_4] : memref<128x128xf32, #tpu.memory_space<vmem>>, vector<128x128xf32>
    %cst_5 = arith.constant dense<0.000000e+00> : vector<4x128xf32>
    %12 = tpu.matmul %10, %11, %cst_5 {dimension_numbers = #tpu.dot_dimension_numbers<[1], [0], [0], [1], [0, 0, 1, 1], [], []>} : vector<4x128xf32>, vector<128x128xf32>, vector<4x128xf32> -> vector<4x128xf32>
    %c0_6 = arith.constant 0 : index
    %c0_7 = arith.constant 0 : index
    %13 = vector.load %arg3[%c0_6, %c0_7] : memref<1x128xf32, #tpu.memory_space<vmem>>, vector<1x128xf32>
    %14 = vector.broadcast %13 : vector<1x128xf32> to vector<4x128xf32>
    %15 = arith.addf %12, %14 : vector<4x128xf32>
    %16 = arith.mulf %15, %15 : vector<4x128xf32>
    %cst_8 = arith.constant dense<0.000000e+00> : vector<4xf32>
    %17 = vector.multi_reduction <add>, %16, %cst_8 [1] : vector<4x128xf32> to vector<4xf32>
    %18 = vector.shape_cast %17 : vector<4xf32> to vector<4x1xf32>
    %cst_9 = arith.constant 2.500000e-01 : f32
    %19 = vector.broadcast %cst_9 : f32 to vector<4x1xf32>
    %20 = arith.mulf %18, %19 : vector<4x1xf32>
    %cst_10 = arith.constant 1.1920929E-7 : f32
    %21 = vector.broadcast %cst_10 : f32 to vector<4x1xf32>
    %22 = arith.addf %20, %21 : vector<4x1xf32>
    %23 = math.rsqrt %22 : vector<4x1xf32>
    %24 = vector.broadcast %23 : vector<4x1xf32> to vector<4x128xf32>
    %25 = arith.mulf %15, %24 : vector<4x128xf32>
    %c0_11 = arith.constant 0 : index
    %c0_12 = arith.constant 0 : index
    %26 = vector.load %arg4[%c0_11, %c0_12] : memref<1x128xf32, #tpu.memory_space<vmem>>, vector<1x128xf32>
    %27 = vector.broadcast %26 : vector<1x128xf32> to vector<4x128xf32>
    %28 = arith.mulf %25, %27 : vector<4x128xf32>
    %c0_13 = arith.constant 0 : index
    %c0_14 = arith.constant 0 : index
    %29 = vector.load %arg5[%c0_13, %c0_14] : memref<4x128xf32, #tpu.memory_space<vmem>>, vector<4x128xf32>
    tpu.vector_store %arg5[%c0_13, %c0_14], %28 {strides = array<i32>} : memref<4x128xf32, #tpu.memory_space<vmem>>, vector<4x128xf32>,
    return
  }
  func.func @transform_0(%arg0: i32) -> (i32, i32) {
    %c0_i32 = arith.constant 0 : i32
    %c0_i32_0 = arith.constant 0 : i32
    return %arg0, %c0_i32 : i32, i32
  }
  func.func @transform_1(%arg0: i32) -> (i32, i32) {
    %c0_i32 = arith.constant 0 : i32
    %c0_i32_0 = arith.constant 0 : i32
    %c0_i32_1 = arith.constant 0 : i32
    return %c0_i32, %c0_i32_0 : i32, i32
  }
  func.func @transform_2(%arg0: i32) -> (i32, i32) {
    %c0_i32 = arith.constant 0 : i32
    %c0_i32_0 = arith.constant 0 : i32
    %c0_i32_1 = arith.constant 0 : i32
    return %c0_i32, %c0_i32_0 : i32, i32
  }
  func.func @transform_3(%arg0: i32) -> (i32, i32) {
    %c0_i32 = arith.constant 0 : i32
    %c0_i32_0 = arith.constant 0 : i32
    %c0_i32_1 = arith.constant 0 : i32
    return %c0_i32, %c0_i32_0 : i32, i32
  }
  func.func @transform_4(%arg0: i32) -> (i32, i32) {
    %c0_i32 = arith.constant 0 : i32
    %c0_i32_0 = arith.constant 0 : i32
    return %arg0, %c0_i32 : i32, i32
  }
}

</mosaic_0001>

<bundles_post_ra>
// kernel: tpu_custom_call.1
= control target key start
LH: loop header
LB: loop body
LE: loop exit
PB: predicated region body
PF: predicated region fallthrough
CT: control target
= control target key end

     0   :  { %9 = vsyncpa [#allocation3], 0  ;;  %s284_s0 = inlined_call_operand.hbm [shape: f32[4,128], index: 0, kind: input, shape index: {}]   ;;  %s285_s1 = inlined_call_operand.hbm [shape: f32[128,128], index: 1, kind: input, shape index: {}]   ;;  %s286_s2 = inlined_call_operand.vmem [shape: f32[1,128], index: 2, kind: input, shape index: {}]   ;;  %s287_s3 = inlined_call_operand.vmem [shape: f32[1,128], index: 3, kind: input, shape index: {}]   ;;  %s288_s4 = inlined_call_operand.hbm [shape: f32[4,128], index: 4, kind: output, shape index: {}]  }
   0x1   :  { %10 = vsyncpa [#allocation6], 0 }
   0x2   :  { %11 = vsyncpa [#allocation4], 0  ;;  %s17_s17 = sshll.u32 %s284_s0, 4  ;;  %s237_s18 = smov [#allocation2]   ;;  %s18_s17 = int_to_ptr.hbm [resolvable:$true] %s17_s17 }
   0x3   :  { %s19_s19 = sshll.u32 %s237_s18, 4  ;;  %s27_s22 = sshll.u32 %s285_s1, 4  ;;  %s20_s19 = int_to_ptr.vmem [resolvable:$true] %s19_s19  ;;  %s28_s22 = int_to_ptr.hbm [resolvable:$true] %s27_s22 }
   0x4   :  { %22 = dma.hbm_to_vmem [thread:$0]  %s18_s17, 64, %s20_s19, [#allocation3]  }
   0x5   :  { %s238_s23 = smov [#allocation5]   ;;  %s239_s25 = smov 128  }
   0x6   :  { %s29_s24 = sshll.u32 %s238_s23, 4  ;;  %s240_s26 = smov 8   ;;  %s30_s24 = int_to_ptr.vmem [resolvable:$true] %s29_s24 }
   0x7   :  { %35 = dma.hbm_to_vmem [thread:$0]  %s28_s22, 2048, %s30_s24, [#allocation6], %s239_s25, %s239_s25, %s240_s26  }
   0x8   :  { %231 = dma.done.wait [#allocation3], 64  }
   0x9   :  { %232 = vsyncadd [#allocation3], 4294967232 }
   0xa   :  { %233 = dma.done.wait [#allocation6], 2048  }
   0xb   :  { %234 = vsyncadd [#allocation6], 4294965248  ;;  %v48_v0 = vld [vmem:[#allocation2] sm:$0xf]  ;;  %vm50_vm0 = vcmask 1043456   ;;  %v81_v2 = vld [vmem:[#allocation5 + $0x70] sm:$0xff] }
   0xc   :  { %v82_v1 = vld [vmem:[#allocation5 + $0x78] sm:$0xff]  ;;  %v49_v3 = vmul.f32 %v48_v0, %v48_v0  ;;  %v80_v4 = vld [vmem:[#allocation5 + $0x68] sm:$0xff]  ;;  %v79_v6 = vld [vmem:[#allocation5 + $0x60] sm:$0xff]  ;;  %s241_s28 = smov [#allocation7]   ;;  %s137_s6 = sshll.u32 %s288_s4, 4  ;;  %s138_s6 = int_to_ptr.hbm [resolvable:$true] %s137_s6 }
   0xd   :  { %87 = vmatpush.msra.mxu0 %v82_v1  ;;  %v78_v7 = vld [vmem:[#allocation5 + $0x58] sm:$0xff]  ;;  %v77_v8 = vld [vmem:[#allocation5 + $0x50] sm:$0xff]  ;;  %v76_v9 = vld [vmem:[#allocation5 + $0x48] sm:$0xff]  ;;  %s135_s29 = sshll.u32 %s241_s28, 4  ;;  %s136_s29 = int_to_ptr.vmem [resolvable:$true] %s135_s29 }
   0xe   :  { %v51_v5 = vsel %vm50_vm0, %v49_v3, 0.0  ;;  %v75_v10 = vld [vmem:[#allocation5 + $0x40] sm:$0xff]  ;;  %v74_v11 = vld [vmem:[#allocation5 + $0x38] sm:$0xff]  ;;  %v73_v12 = vld [vmem:[#allocation5 + $0x30] sm:$0xff] }
   0xf   :  { %88 = vmatpush.msra.mxu0 %v81_v2  ;;  %52 = vadd.xlane.f32.xlu0 %v51_v5  ;;  %v72_v13 = vld [vmem:[#allocation5 + $0x28] sm:$0xff]  ;;  %v71_v14 = vld [vmem:[#allocation5 + $0x20] sm:$0xff]  ;;  %v70_v15 = vld [vmem:[#allocation5 + $0x18] sm:$0xff] }
  0x10   :  { %v69_v16 = vld [vmem:[#allocation5 + $0x10] sm:$0xff]  ;;  %v68_v17 = vld [vmem:[#allocation5 + $0x8] sm:$0xff]  ;;  %v67_v18 = vld [vmem:[#allocation5] sm:$0xff] }
  0x11   :  { %89 = vmatpush.msra.mxu0 %v80_v4  ;;  %v153_v30 = vld [vmem:[%s286_s2] ss:$0 sm:$0xff] }
  0x12   :  { %v154_v44 = vld [vmem:[%s287_s3] ss:$0 sm:$0xff] }
  0x13   :  { %90 = vmatpush.msra.mxu0 %v79_v6 }
  0x15   :  { %91 = vmatpush.msra.mxu0 %v78_v7 }
  0x17   :  { %92 = vmatpush.msra.mxu0 %v77_v8 }
  0x19   :  { %93 = vmatpush.msra.mxu0 %v76_v9 }
  0x1b   :  { %94 = vmatpush.msra.mxu0 %v75_v10 }
  0x1d   :  { %95 = vmatpush.msra.mxu0 %v74_v11 }
  0x1f   :  { %96 = vmatpush.msra.mxu0 %v73_v12 }
  0x21   :  { %97 = vmatpush.msra.mxu0 %v72_v13 }
  0x23   :  { %98 = vmatpush.msra.mxu0 %v71_v14 }
  0x25   :  { %99 = vmatpush.msra.mxu0 %v70_v15 }
  0x27   :  { %100 = vmatpush.msra.mxu0 %v69_v16 }
  0x29   :  { %101 = vmatpush.msra.mxu0 %v68_v17 }
  0x2b   :  { %102 = vmatpush.msra.mxu0 %v67_v18 }
  0x82   :  { %v53_v19 = vpop.xlane.xlu0 %52 }
  0x83   :  { %v54_v20 = vmul.f32 0.25, %v53_v19 }
  0x85   :  { %v55_v21 = vadd.f32 1.1920929e-07, %v54_v20 }
  0x87   :  { %155 = vrsqrt.f32 %v55_v21  ;;  %vm62_vm2 = vweird.f32 %v55_v21 }
  0x8d   :  { %v156_v22 = vpop.eup %155 }
  0x8e   :  { %v57_v23 = vmul.f32 %v156_v22, %v55_v21  ;;  %vm63_vm1 = vweird.f32 %v156_v22 }
  0x8f   :  { %vm64_vm3 = vmor %vm62_vm2, %vm63_vm1 }
  0x90   :  { %v58_v24 = vmul.f32 %v156_v22, %v57_v23 }
  0x92   :  { %v59_v25 = vmul.f32 0.5, %v58_v24 }
  0x94   :  { %v60_v26 = vsub.f32 1.5, %v59_v25 }
  0x96   :  { %v61_v27 = vmul.f32 %v156_v22, %v60_v26 }
  0x98   :  { %v65_v28 = vsel %vm64_vm3, %v156_v22, %v61_v27 }
  0x99   :  { %v66_v29 = vmul.f32 %v65_v28, %v48_v0 }
  0x9b   :  { %103 = vmatmul.f32.vlgmr.msra.gmra.mxu0 %v66_v29 }
 0x118   :  { %v104_v31 = vpop.f32.mrf.mxu0 }
 0x119   :  { %v105_v32 = vadd.f32 %v153_v30, %v104_v31 }
 0x11b   :  { %v107_v33 = vmul.f32 %v105_v32, %v105_v32 }
 0x11d   :  { %v108_v34 = vsel %vm50_vm0, %v107_v33, 0.0 }
 0x11e   :  { %109 = vadd.xlane.f32.xlu0 %v108_v34 }
 0x191   :  { %v110_v35 = vpop.xlane.xlu0 %109 }
 0x192   :  { %v111_v36 = vmul.f32 0.25, %v110_v35 }
 0x194   :  { %v112_v37 = vadd.f32 1.1920929e-07, %v111_v36 }
 0x196   :  { %157 = vrsqrt.f32 %v112_v37  ;;  %vm119_vm5 = vweird.f32 %v112_v37 }
 0x19c   :  { %v158_v38 = vpop.eup %157 }
 0x19d   :  { %v114_v39 = vmul.f32 %v158_v38, %v112_v37  ;;  %vm120_vm4 = vweird.f32 %v158_v38 }
 0x19e   :  { %vm121_vm6 = vmor %vm119_vm5, %vm120_vm4 }
 0x19f   :  { %v115_v40 = vmul.f32 %v158_v38, %v114_v39 }
 0x1a1   :  { %v116_v41 = vmul.f32 0.5, %v115_v40 }
 0x1a3   :  { %v117_v42 = vsub.f32 1.5, %v116_v41 }
 0x1a5   :  { %v118_v43 = vmul.f32 %v158_v38, %v117_v42 }
 0x1a7   :  { %v122_v45 = vsel %vm121_vm6, %v158_v38, %v118_v43 }
 0x1a8   :  { %v123_v46 = vmul.f32 %v122_v45, %v105_v32 }
 0x1aa   :  { %v128_v47 = vmul.f32 %v154_v44, %v123_v46 }
 0x1ac   :  { %129 = vst [vmem:[#allocation7] sm:$0xf] %v128_v47 }
 0x1ad   :  { %140 = dma.vmem_to_hbm [thread:$0]  %s136_s29, 64, %s138_s6, [#allocation4]  }
 0x1ae   :  { %235 = dma.done.wait [#allocation4], 64  }
 0x1af   :  { %236 = vsyncadd [#allocation4], 4294967232 }
 0x1b0   :  { %145 = vsyncpa [#allocation3], 1 }
 0x1b1   :  { %146 = vsyncpa [#allocation6], 1 }
 0x1b2   :  { %147 = vsyncpa [#allocation4], 1 }

</bundles_post_ra>
